<compile_context>
chip_gen: v7x
topology: tpu7x:2x2x1
jax: 0.10.0
libtpu: 0.0.40
codegen_flags: <defaults>
</compile_context>

<pallas_src>
import functools
import math

import jax
import jax.numpy as jnp
from jax.experimental import pallas as pl
from jax.experimental.pallas import tpu as pltpu


_PARALLEL = pltpu.CompilerParams(dimension_semantics=("parallel",))


# ------------------------------ in-kernel helpers ----------------------------


def _ln_f32(x, g):
    """F.layer_norm over last dim, eps=1e-5, weight only (bias=False)."""
    x = x.astype(jnp.float32)
    mu = jnp.mean(x, axis=-1, keepdims=True)
    xc = x - mu
    var = jnp.mean(xc * xc, axis=-1, keepdims=True)
    return xc * jax.lax.rsqrt(var + 1e-5) * g.astype(jnp.float32)


# ------------------------------- Pallas kernels ------------------------------


def _ln_kernel(x_ref, g_ref, o_ref):
    o_ref[...] = _ln_f32(x_ref[...], g_ref[...]).astype(o_ref.dtype)


def _ln_qkv_kernel(x_ref, g_ref, w_ref, b_ref, q_ref, kv_ref):
    d = q_ref.shape[-1]
    h = _ln_f32(x_ref[...], g_ref[...])
    y = jnp.dot(h.astype(w_ref.dtype), w_ref[...], preferred_element_type=jnp.float32)
    y = y + b_ref[...].astype(jnp.float32)
    q_ref[...] = y[:, :d].astype(q_ref.dtype)
    kv_ref[...] = y[:, d:].astype(kv_ref.dtype)


def _qkv_kernel(x_ref, w_ref, b_ref, q_ref, kv_ref):
    d = q_ref.shape[-1]
    y = jnp.dot(x_ref[...].astype(w_ref.dtype), w_ref[...],
                preferred_element_type=jnp.float32)
    y = y + b_ref[...].astype(jnp.float32)
    q_ref[...] = y[:, :d].astype(q_ref.dtype)
    kv_ref[...] = y[:, d:].astype(kv_ref.dtype)


def _ln_proj_kernel(x_ref, g_ref, w_ref, b_ref, o_ref):
    h = _ln_f32(x_ref[...], g_ref[...])
    y = jnp.dot(h.astype(w_ref.dtype), w_ref[...], preferred_element_type=jnp.float32)
    o_ref[...] = (y + b_ref[...].astype(jnp.float32)).astype(o_ref.dtype)


def _proj_kernel(x_ref, w_ref, b_ref, o_ref):
    y = jnp.dot(x_ref[...].astype(w_ref.dtype), w_ref[...],
                preferred_element_type=jnp.float32)
    o_ref[...] = (y + b_ref[...].astype(jnp.float32)).astype(o_ref.dtype)


def _proj_res_kernel(x_ref, res_ref, w_ref, b_ref, o_ref):
    y = jnp.dot(x_ref[...].astype(w_ref.dtype), w_ref[...],
                preferred_element_type=jnp.float32)
    y = y + b_ref[...].astype(jnp.float32) + res_ref[...].astype(jnp.float32)
    o_ref[...] = y.astype(o_ref.dtype)


def _proj_res_ln_kernel(x_ref, res_ref, w_ref, b_ref, g_ref, o_ref):
    y = jnp.dot(x_ref[...].astype(w_ref.dtype), w_ref[...],
                preferred_element_type=jnp.float32)
    y = y + b_ref[...].astype(jnp.float32) + res_ref[...].astype(jnp.float32)
    o_ref[...] = _ln_f32(y, g_ref[...]).astype(o_ref.dtype)


def _ln_ffn_res_kernel(x_ref, g_ref, w1_ref, b1_ref, w2_ref, b2_ref, o_ref):
    x = x_ref[...]
    h = _ln_f32(x, g_ref[...])
    h = jnp.dot(h.astype(w1_ref.dtype), w1_ref[...], preferred_element_type=jnp.float32)
    h = jnp.maximum(h + b1_ref[...].astype(jnp.float32), 0.0)
    y = jnp.dot(h.astype(w2_ref.dtype), w2_ref[...], preferred_element_type=jnp.float32)
    y = y + b2_ref[...].astype(jnp.float32) + x.astype(jnp.float32)
    o_ref[...] = y.astype(o_ref.dtype)


def _ffn_res_ln_kernel(x_ref, w1_ref, b1_ref, w2_ref, b2_ref, g_ref, o_ref):
    x = x_ref[...].astype(jnp.float32)
    h = jnp.dot(x_ref[...].astype(w1_ref.dtype), w1_ref[...],
                preferred_element_type=jnp.float32)
    h = jnp.maximum(h + b1_ref[...].astype(jnp.float32), 0.0)
    y = jnp.dot(h.astype(w2_ref.dtype), w2_ref[...], preferred_element_type=jnp.float32)
    y = y + b2_ref[...].astype(jnp.float32) + x
    o_ref[...] = _ln_f32(y, g_ref[...]).astype(o_ref.dtype)


def _attn_body(q, kv, bias, o_ref, *, n_heads, scale, causal):
    sq, d = q.shape
    sk = kv.shape[0]
    dh = d // n_heads
    qf = q.astype(jnp.float32) * scale          # fold 1/sqrt(dh) into q (smaller multiply)
    kvf = kv.astype(jnp.float32)
    k = kvf[:, :d]
    v = kvf[:, d:]
    if causal:
        qi = jax.lax.broadcasted_iota(jnp.int32, (sq, sk), 0)
        ki = jax.lax.broadcasted_iota(jnp.int32, (sq, sk), 1)
        # finite mask value avoids -inf/NaN issues in low-precision dtypes
        causal_bias = jnp.where(ki > qi, jnp.float32(-1e9), jnp.float32(0.0))
    outs = []
    for h in range(n_heads):                    # static unroll over heads, lane-dense output
        sl = slice(h * dh, (h + 1) * dh)
        s = jnp.dot(qf[:, sl], k[:, sl].T, preferred_element_type=jnp.float32)
        if bias is not None:
            s = s + bias
        if causal:
            s = s + causal_bias
        m = jnp.max(s, axis=-1, keepdims=True)
        p = jnp.exp(s - m)
        inv = pl.reciprocal(jnp.sum(p, axis=-1, keepdims=True), approx=False)
        o_h = jnp.dot(p, v[:, sl], preferred_element_type=jnp.float32) * inv
        outs.append(o_h)
    o_ref[...] = jnp.concatenate(outs, axis=-1).astype(o_ref.dtype)


def _attn_kernel(q_ref, kv_ref, o_ref, *, n_heads, scale, causal):
    _attn_body(q_ref[...], kv_ref[...], None, o_ref,
               n_heads=n_heads, scale=scale, causal=causal)


def _attn_bias_kernel(q_ref, kv_ref, bias_ref, o_ref, *, n_heads, scale, causal):
    _attn_body(q_ref[...], kv_ref[...], bias_ref[...].astype(jnp.float32), o_ref,
               n_heads=n_heads, scale=scale, causal=causal)


# ------------------------------- thin wrappers --------------------------------


def _row_tiled_call(kernel, row_inputs, pinned_inputs, out_dims, dtype, max_tile=256):
    """Row-tiled pallas_call: row_inputs are [N, *] streamed tiles, pinned_inputs are
    2-D weight/bias/ln arrays held resident (constant index_map)."""
    n = row_inputs[0].shape[0]
    tile = n if n <= max_tile else max_tile
    grid = (pl.cdiv(n, tile),)
    in_specs = [pl.BlockSpec((tile, a.shape[1]), lambda i: (i, 0)) for a in row_inputs]
    in_specs += [pl.BlockSpec(a.shape, lambda i: (0, 0)) for a in pinned_inputs]
    out_shape = tuple(jax.ShapeDtypeStruct((n, d), dtype) for d in out_dims)
    out_specs = tuple(pl.BlockSpec((tile, d), lambda i: (i, 0)) for d in out_dims)
    single = len(out_dims) == 1
    return pl.pallas_call(
        kernel,
        out_shape=out_shape[0] if single else out_shape,
        grid=grid,
        in_specs=in_specs,
        out_specs=out_specs[0] if single else out_specs,
        compiler_params=_PARALLEL,
    )(*row_inputs, *pinned_inputs)


def ln_qkv_proj(x, g, w, b):
    d = g.shape[-1]
    return _row_tiled_call(_ln_qkv_kernel, [x],
                           [g.reshape(1, -1), w, b.reshape(1, -1)],
                           [d, w.shape[1] - d], x.dtype)


def qkv_proj(x, w, b):
    d = x.shape[1]
    return _row_tiled_call(_qkv_kernel, [x], [w, b.reshape(1, -1)],
                           [d, w.shape[1] - d], x.dtype)


def ln_proj(x, g, w, b):
    return _row_tiled_call(_ln_proj_kernel, [x],
                           [g.reshape(1, -1), w, b.reshape(1, -1)],
                           [w.shape[1]], x.dtype)


def proj(x, w, b):
    return _row_tiled_call(_proj_kernel, [x], [w, b.reshape(1, -1)],
                           [w.shape[1]], x.dtype)


def proj_res(x, res, w, b):
    return _row_tiled_call(_proj_res_kernel, [x, res], [w, b.reshape(1, -1)],
                           [w.shape[1]], res.dtype)


def proj_res_ln(x, res, w, b, g):
    return _row_tiled_call(_proj_res_ln_kernel, [x, res],
                           [w, b.reshape(1, -1), g.reshape(1, -1)],
                           [w.shape[1]], res.dtype)


def ln_ffn_res(x, g, w1, b1, w2, b2):
    return _row_tiled_call(_ln_ffn_res_kernel, [x],
                           [g.reshape(1, -1), w1, b1.reshape(1, -1), w2, b2.reshape(1, -1)],
                           [x.shape[1]], x.dtype)


def ffn_res_ln(x, g, w1, b1, w2, b2):
    return _row_tiled_call(_ffn_res_ln_kernel, [x],
                           [w1, b1.reshape(1, -1), w2, b2.reshape(1, -1), g.reshape(1, -1)],
                           [x.shape[1]], x.dtype)


def final_ln(x, g):
    return _row_tiled_call(_ln_kernel, [x], [g.reshape(1, -1)], [x.shape[1]], x.dtype)


def attention(q, kv, n_heads, causal, bias=None):
    """q: [B, Sq, D], kv: [B, Sk, 2D] (k|v concatenated), bias: optional [B, Sq, Sk]."""
    B, Sq, D = q.shape
    Sk = kv.shape[1]
    scale = 1.0 / math.sqrt(D // n_heads)
    if bias is None:
        kern = functools.partial(_attn_kernel, n_heads=n_heads, scale=scale, causal=causal)
        in_specs = [pl.BlockSpec((None, Sq, D), lambda b: (b, 0, 0)),
                    pl.BlockSpec((None, Sk, 2 * D), lambda b: (b, 0, 0))]
        args = (q, kv)
    else:
        kern = functools.partial(_attn_bias_kernel, n_heads=n_heads, scale=scale, causal=causal)
        in_specs = [pl.BlockSpec((None, Sq, D), lambda b: (b, 0, 0)),
                    pl.BlockSpec((None, Sk, 2 * D), lambda b: (b, 0, 0)),
                    pl.BlockSpec((None, Sq, Sk), lambda b: (b, 0, 0))]
        args = (q, kv, bias)
    return pl.pallas_call(
        kern,
        out_shape=jax.ShapeDtypeStruct((B, Sq, D), q.dtype),
        grid=(B,),
        in_specs=in_specs,
        out_specs=pl.BlockSpec((None, Sq, D), lambda b: (b, 0, 0)),
        compiler_params=_PARALLEL,
    )(*args)


# ------------------------------- decoder (glue) --------------------------------


def _make_bias(B, Sq, Sk, attn_mask):
    """Additive f32 bias from an explicit mask; None if no mask (causal is in-kernel)."""
    if attn_mask is None:
        return None
    m = attn_mask
    if m.dtype == jnp.bool_:
        m = jnp.where(m, jnp.float32(-1e9), jnp.float32(0.0))
    else:
        m = m.astype(jnp.float32)
    return jnp.broadcast_to(m, (B, Sq, Sk))


def decoder_layer(x, kv_enc, p, n_heads, norm_first, mask_future, sa_bias, ca_bias):
    B, S, D = x.shape
    Se = kv_enc.shape[1]
    x2 = x.reshape(B * S, D)
    sa, ca = p["self_attn"], p["cross_attn"]
    if norm_first:
        q, kv = ln_qkv_proj(x2, p["ln1"], sa["wqkv"], sa["bqkv"])
        a = attention(q.reshape(B, S, D), kv.reshape(B, S, 2 * D), n_heads, mask_future, sa_bias)
        x2 = proj_res(a.reshape(B * S, D), x2, sa["wo"], sa["bo"])

        q = ln_proj(x2, p["ln2"], ca["wq"], ca["bq"])
        a = attention(q.reshape(B, S, D), kv_enc, n_heads, False, ca_bias)
        x2 = proj_res(a.reshape(B * S, D), x2, ca["wo"], ca["bo"])

        x2 = ln_ffn_res(x2, p["ln3"], p["w1"], p["b1"], p["w2"], p["b2"])
    else:
        q, kv = qkv_proj(x2, sa["wqkv"], sa["bqkv"])
        a = attention(q.reshape(B, S, D), kv.reshape(B, S, 2 * D), n_heads, mask_future, sa_bias)
        x2 = proj_res_ln(a.reshape(B * S, D), x2, sa["wo"], sa["bo"], p["ln1"])

        q = proj(x2, ca["wq"], ca["bq"])
        a = attention(q.reshape(B, S, D), kv_enc, n_heads, False, ca_bias)
        x2 = proj_res_ln(a.reshape(B * S, D), x2, ca["wo"], ca["bo"], p["ln2"])

        x2 = ffn_res_ln(x2, p["ln3"], p["w1"], p["b1"], p["w2"], p["b2"])
    return x2.reshape(B, S, D)


def transformer_decoder(tgt, enc_x, params, n_heads, norm_first,
                        enc_attn_mask=None, dec_attn_mask=None, mask_future=True):
    B, St, D = tgt.shape
    Se = enc_x.shape[1]
    sa_bias = _make_bias(B, St, St, dec_attn_mask)
    ca_bias = _make_bias(B, St, Se, enc_attn_mask)
    enc2 = enc_x.reshape(B * Se, D)
    out = tgt
    for lp in params["layers"]:
        # cross-attention K/V of enc_x: single fused [D, 2D] matmul, once per layer
        kv_enc = proj(enc2, lp["cross_attn"]["wkv"], lp["cross_attn"]["bkv"]).reshape(B, Se, 2 * D)
        out = decoder_layer(out, kv_enc, lp, n_heads, norm_first, mask_future, sa_bias, ca_bias)
    if norm_first:
        out = final_ln(out.reshape(B * St, D), params["final_ln"]).reshape(B, St, D)
    return out


# -------------------------------- param init -----------------------------------


def init_params(key, num_layers, d_model, dim_feedforward):
    def dense(k, din, dout):
        kw, kb = jax.random.split(k)
        return (jax.random.normal(kw, (din, dout), jnp.float32) * 0.02,
                jax.random.normal(kb, (dout,), jnp.float32) * 0.02)

    def self_attn(k):
        ks = jax.random.split(k, 4)
        wq, bq = dense(ks[0], d_model, d_model)
        wk, bk = dense(ks[1], d_model, d_model)
        wv, bv = dense(ks[2], d_model, d_model)
        wo, bo = dense(ks[3], d_model, d_model)
        return dict(wqkv=jnp.concatenate([wq, wk, wv], axis=1),
                    bqkv=jnp.concatenate([bq, bk, bv]),
                    wo=wo, bo=bo)

    def cross_attn(k):
        ks = jax.random.split(k, 4)
        wq, bq = dense(ks[0], d_model, d_model)
        wk, bk = dense(ks[1], d_model, d_model)
        wv, bv = dense(ks[2], d_model, d_model)
        wo, bo = dense(ks[3], d_model, d_model)
        return dict(wq=wq, bq=bq,
                    wkv=jnp.concatenate([wk, wv], axis=1),
                    bkv=jnp.concatenate([bk, bv]),
                    wo=wo, bo=bo)

    layers = []
    for _ in range(num_layers):
        key, k1, k2, k3, k4 = jax.random.split(key, 5)
        w1, b1 = dense(k3, d_model, dim_feedforward)
        w2, b2 = dense(k4, dim_feedforward, d_model)
        layers.append(dict(
            self_attn=self_attn(k1), cross_attn=cross_attn(k2),
            w1=w1, b1=b1, w2=w2, b2=b2,
            ln1=jnp.ones((d_model,), jnp.float32),
            ln2=jnp.ones((d_model,), jnp.float32),
            ln3=jnp.ones((d_model,), jnp.float32)))
    return dict(layers=layers, final_ln=jnp.ones((d_model,), jnp.float32))


# ----------------------------------- main ---------------------------------------

if __name__ == "__main__":
    NUM_LAYERS, D_MODEL, N_HEADS, DIM_FF = 2, 32, 4, 64
    B, S_TGT, S_ENC = 2, 8, 8
    NORM_FIRST = True

    key = jax.random.PRNGKey(0)
    kp, kt, ke = jax.random.split(key, 3)
    params = init_params(kp, NUM_LAYERS, D_MODEL, DIM_FF)
    tgt = jax.random.normal(kt, (B, S_TGT, D_MODEL), jnp.float32)
    enc_x = jax.random.normal(ke, (B, S_ENC, D_MODEL), jnp.float32)

    out = transformer_decoder(tgt, enc_x, params, n_heads=N_HEADS,
                              norm_first=NORM_FIRST, mask_future=True)
    jax.block_until_ready(out)
    assert out.shape == (B, S_TGT, D_MODEL)
    print("KERNEL_OK")
</pallas_src>

<mosaic_0001>
module attributes {stable_mosaic.version = 11 : i64} {
  func.func @_proj_kernel(%arg0: i32, %arg1: memref<16x32xf32, #tpu.memory_space<vmem>>, %arg2: memref<32x64xf32, #tpu.memory_space<vmem>>, %arg3: memref<1x64xf32, #tpu.memory_space<vmem>>, %arg4: memref<16x64xf32, #tpu.memory_space<vmem>>) attributes {dimension_semantics = [#tpu.dimension_semantics<parallel>], iteration_bounds = array<i64: 1>, scalar_prefetch = 0 : i64, scratch_operands = 0 : i64, tpu.core_type = #tpu.core_type<tc>, window_params = [{transform_indices = @transform_0, window_bounds = array<i64: 16, 32>}, {pipeline_mode = #tpu.pipeline_mode<synchronous>, transform_indices = @transform_1, window_bounds = array<i64: 32, 64>}, {pipeline_mode = #tpu.pipeline_mode<synchronous>, transform_indices = @transform_2, window_bounds = array<i64: 1, 64>}, {transform_indices = @transform_3, window_bounds = array<i64: 16, 64>}]} {
    %c0 = arith.constant 0 : index
    %c0_0 = arith.constant 0 : index
    %0 = vector.load %arg1[%c0, %c0_0] : memref<16x32xf32, #tpu.memory_space<vmem>>, vector<16x32xf32>
    %c0_1 = arith.constant 0 : index
    %c0_2 = arith.constant 0 : index
    %1 = vector.load %arg2[%c0_1, %c0_2] : memref<32x64xf32, #tpu.memory_space<vmem>>, vector<32x64xf32>
    %cst = arith.constant dense<0.000000e+00> : vector<16x64xf32>
    %2 = tpu.matmul %0, %1, %cst {dimension_numbers = #tpu.dot_dimension_numbers<[1], [0], [0], [1], [0, 0, 1, 1], [], []>} : vector<16x32xf32>, vector<32x64xf32>, vector<16x64xf32> -> vector<16x64xf32>
    %c0_3 = arith.constant 0 : index
    %c0_4 = arith.constant 0 : index
    %3 = vector.load %arg3[%c0_3, %c0_4] : memref<1x64xf32, #tpu.memory_space<vmem>>, vector<1x64xf32>
    %4 = vector.broadcast %3 : vector<1x64xf32> to vector<16x64xf32>
    %5 = arith.addf %2, %4 : vector<16x64xf32>
    %c0_5 = arith.constant 0 : index
    %c0_6 = arith.constant 0 : index
    %6 = vector.load %arg4[%c0_5, %c0_6] : memref<16x64xf32, #tpu.memory_space<vmem>>, vector<16x64xf32>
    tpu.vector_store %arg4[%c0_5, %c0_6], %5 {strides = array<i32>} : memref<16x64xf32, #tpu.memory_space<vmem>>, vector<16x64xf32>,
    return
  }
  func.func @transform_0(%arg0: i32) -> (i32, i32) {
    %c0_i32 = arith.constant 0 : i32
    %c0_i32_0 = arith.constant 0 : i32
    return %arg0, %c0_i32 : i32, i32
  }
  func.func @transform_1(%arg0: i32) -> (i32, i32) {
    %c0_i32 = arith.constant 0 : i32
    %c0_i32_0 = arith.constant 0 : i32
    %c0_i32_1 = arith.constant 0 : i32
    return %c0_i32, %c0_i32_0 : i32, i32
  }
  func.func @transform_2(%arg0: i32) -> (i32, i32) {
    %c0_i32 = arith.constant 0 : i32
    %c0_i32_0 = arith.constant 0 : i32
    %c0_i32_1 = arith.constant 0 : i32
    return %c0_i32, %c0_i32_0 : i32, i32
  }
  func.func @transform_3(%arg0: i32) -> (i32, i32) {
    %c0_i32 = arith.constant 0 : i32
    %c0_i32_0 = arith.constant 0 : i32
    return %arg0, %c0_i32 : i32, i32
  }
}

</mosaic_0001>

<bundles_post_ra>
// kernel: tpu_custom_call.1
= control target key start
LH: loop header
LB: loop body
LE: loop exit
PB: predicated region body
PF: predicated region fallthrough
CT: control target
= control target key end

     0   :  { %8 = vsyncpa [#allocation3], 0  ;;  %s337_s0 = inlined_call_operand.hbm [shape: f32[16,32], index: 0, kind: input, shape index: {}]   ;;  %s338_s1 = inlined_call_operand.hbm [shape: f32[32,64], index: 1, kind: input, shape index: {}]   ;;  %s339_s2 = inlined_call_operand.vmem [shape: f32[1,64], index: 2, kind: input, shape index: {}]   ;;  %s340_s3 = inlined_call_operand.hbm [shape: f32[16,64], index: 3, kind: output, shape index: {}]  }
   0x1   :  { %9 = vsyncpa [#allocation6], 0 }
   0x2   :  { %10 = vsyncpa [#allocation4], 0  ;;  %s264_s12 = smov [#allocation2]   ;;  %s192_s16 = scalar_lea.hbm %s337_s0, 256 }
   0x3   :  { %s16_s13 = sshll.u32 %s264_s12, 4  ;;  %p193_p0 = scmp.ne.s32.totalorder %s337_s0, %s192_s16  ;;  %s17_s13 = int_to_ptr.vmem [resolvable:$true] %s16_s13 }
   0x4   :  { %p196_p1 = scmp.lt.u32.totalorder %s192_s16, %s337_s0 }
   0x6   :  { %p198_p2 = pnand %p196_p1, %p193_p0 }
   0x8   :  { %201 = shalt.err (!%p198_p2)
}
   0x9   :  { %s202_s21 = scalar_lea.vmem %s17_s13, 256  ;;  %p207_p4 = scmp.lt.s32.totalorder %s17_s13, %s17_s13 }
   0xa   :  { %p203_p3 = scmp.ne.s32.totalorder %s17_s13, %s202_s21  ;;  %p208_p5 = scmp.lt.s32.totalorder %s202_s21, %s202_s21 }
   0xc   :  { %p209_p6 = por %p208_p5, %p207_p4 }
   0xe   :  { %p210_p7 = pnand %p209_p6, %p203_p3 }
  0x10   :  { %213 = shalt.err (!%p210_p7)
}
  0x11   :  { %s265_s22 = smov 128   ;;  %s266_s23 = smov 8  }
  0x12   :  { %22 = dma.hbm_to_vmem [thread:$0]  %s337_s0, 256, %s17_s13, [#allocation3], %s265_s22, %s265_s22, %s266_s23  }
  0x13   :  { %s267_s26 = smov [#allocation5]   ;;  %s214_s30 = scalar_lea.hbm %s338_s1, 512 }
  0x14   :  { %s28_s27 = sshll.u32 %s267_s26, 4  ;;  %p215_p8 = scmp.ne.s32.totalorder %s338_s1, %s214_s30  ;;  %s29_s27 = int_to_ptr.vmem [resolvable:$true] %s28_s27 }
  0x15   :  { %p218_p9 = scmp.lt.u32.totalorder %s214_s30, %s338_s1 }
  0x17   :  { %p220_p10 = pnand %p218_p9, %p215_p8 }
  0x19   :  { %223 = shalt.err (!%p220_p10)
}
  0x1a   :  { %s224_s8 = scalar_lea.vmem %s29_s27, 512  ;;  %p229_p12 = scmp.lt.s32.totalorder %s29_s27, %s29_s27 }
  0x1b   :  { %p225_p11 = scmp.ne.s32.totalorder %s29_s27, %s224_s8  ;;  %p230_p13 = scmp.lt.s32.totalorder %s224_s8, %s224_s8 }
  0x1d   :  { %p231_p0 = por %p230_p13, %p229_p12 }
  0x1f   :  { %p232_p1 = pnand %p231_p0, %p225_p11 }
  0x21   :  { %235 = shalt.err (!%p232_p1)
}
  0x22   :  { %34 = dma.hbm_to_vmem [thread:$0]  %s338_s1, 512, %s29_s27, [#allocation6], %s265_s22, %s265_s22, %s266_s23  }
  0x23   :  { %258 = dma.done.wait [#allocation3], 256  }
  0x24   :  { %259 = vsyncadd [#allocation3], 4294967040 }
  0x25   :  { %260 = dma.done.wait [#allocation6], 512  }
  0x26   :  { %261 = vsyncadd [#allocation6], 4294966784  ;;  %vm56_vm0 = vcmask 261120   ;;  %v45_v0 = vld [vmem:[#allocation5] sm:$0xff]  ;;  %v46_v1 = vld [vmem:[#allocation5 + $0x8] sm:$0xff]  ;;  %s268_s11 = smov [#allocation7]  }
  0x27   :  { %v47_v2 = vld [vmem:[#allocation5 + $0x10] sm:$0xff]  ;;  %v179_v3 = vpack.c.bf16 %v46_v1, %v45_v0  ;;  %v48_v4 = vld [vmem:[#allocation5 + $0x18] sm:$0xff]  ;;  %s146_s12 = sshll.u32 %s268_s11, 4  ;;  %vm138_vm1 = vcmask 523264   ;;  %s147_s12 = int_to_ptr.vmem [resolvable:$true] %s146_s12 }
  0x28   :  { %v43_v5 = vld [vmem:[#allocation2] sm:$0xff]  ;;  %v183_v6 = vpack.c.bf16 %v48_v4, %v47_v2  ;;  %v44_v7 = vld [vmem:[#allocation2 + $0x8] sm:$0xff]  ;;  %s236_s13 = scalar_lea.vmem %s147_s12, 256  ;;  %p241_p3 = scmp.lt.s32.totalorder %s147_s12, %s147_s12 }
  0x29   :  { %176 = vmatprep.mubr.msk.f32.mxu0 %vm56_vm0, %v43_v5  ;;  %180 = vmatprep.subr.bf16.mxu0 %v179_v3  ;;  %v159_v8 = vld [vmem:[%s339_s2] ss:$0 sm:$0xff]  ;;  %p237_p2 = scmp.ne.s32.totalorder %s147_s12, %s236_s13  ;;  %p242_p4 = scmp.lt.s32.totalorder %s236_s13, %s236_s13 }
  0x2a   :  { %182 = vmatpush3.bf16.msra.mxu0 %v179_v3 }
  0x2b   :  { %184 = vmatprep.subr.bf16.mxu0 %v183_v6  ;;  %p243_p5 = por %p242_p4, %p241_p3 }
  0x2d   :  { %p244_p6 = pnand %p243_p5, %p237_p2 }
  0x2e   :  { %186 = vmatpush3.bf16.msra.mxu0 %v183_v6 }
  0x31   :  { %177 = vmatmul.mubr.msk.f32.vlgmr.msra.gmra.mrb[0].mxu0 %vm56_vm0, %v44_v7 }
 0x104   :  { %v178_v9 = vpop.f32.mrb[0].mxu0 }
 0x105   :  { %v135_v10 = vadd.f32 %v178_v9, %v159_v8  ;;  %v129_v11 = vpop.f32.mrb[1].mxu0 }
 0x106   :  { %v130_v12 = vadd.f32 %v159_v8, %v129_v11 }
 0x107   :  { %140 = vst.msk [vmem:[#allocation7 + $0x8] sm:$0xff] %vm138_vm1, %v135_v10 }
 0x108   :  { %139 = vst.msk [vmem:[#allocation7] sm:$0xff] %vm138_vm1, %v130_v12 }
 0x109   :  { %247 = shalt.err (!%p244_p6)
}
 0x10a   :  { %s248_s2 = scalar_lea.hbm %s340_s3, 256 }
 0x10b   :  { %p249_p7 = scmp.ne.s32.totalorder %s340_s3, %s248_s2  ;;  %p252_p8 = scmp.lt.u32.totalorder %s248_s2, %s340_s3 }
 0x10d   :  { %p254_p9 = pnand %p252_p8, %p249_p7 }
 0x10f   :  { %257 = shalt.err (!%p254_p9)
}
 0x110   :  { %152 = dma.vmem_to_hbm [thread:$0]  %s147_s12, 256, %s340_s3, [#allocation4], %s265_s22, %s265_s22, %s266_s23  }
 0x111   :  { %262 = dma.done.wait [#allocation4], 256  }
 0x112   :  { %263 = vsyncadd [#allocation4], 4294967040 }
 0x113   :  { %156 = vsyncpa [#allocation3], 1 }
 0x114   :  { %157 = vsyncpa [#allocation6], 1 }
 0x115   :  { %158 = vsyncpa [#allocation4], 1 }

</bundles_post_ra>
